<compile_context>
chip_gen: v5e
topology: v5e:2x2
jax: 0.10.0
libtpu: 0.0.40
codegen_flags: <defaults>
</compile_context>

<pallas_src>
import functools

import jax
import jax.numpy as jnp
from jax import lax
from jax.experimental import pallas as pl
from jax.experimental.pallas import tpu as pltpu

_LANE = 128


def _head3d_kernel(x_ref, w1_ref, b1_ref, w2_ref, b2_ref,
                   gmp_ref, logits_ref, probs_ref,
                   pmax_ref, *, s_total, ts, needs_mask):
    s = pl.program_id(0)

    @pl.when(s == 0)
    def _init():
        pmax_ref[...] = jnp.full_like(pmax_ref, -jnp.inf)

    tile = x_ref[...]
    if needs_mask:
        # Last spatial tile may run past S: mask padded lanes to -inf so the
        # running max is unaffected.
        lane = lax.broadcasted_iota(jnp.int32, tile.shape, 2)
        valid = (s * ts + lane) < s_total
        tile = jnp.where(valid, tile, jnp.array(-jnp.inf, tile.dtype))

    # Steady state: pure elementwise (VPU) running max against the scratch;
    # the cross-lane (XLU) reduction is deferred to the epilogue.
    pmax_ref[...] = jnp.maximum(pmax_ref[...], tile)

    @pl.when(s == pl.num_programs(0) - 1)
    def _epilogue():
        # Single lane-axis reduction -> global adaptive max pool features [B, C].
        gmp = jnp.max(pmax_ref[...], axis=-1)
        gmp_ref[...] = gmp.astype(gmp_ref.dtype)

        # Dropout3d(p=dropout_rate) / Dropout3d(p=fused_dropout_rate) are
        # identity in eval mode.
        # TODO(synk): training-mode channel-wise Dropout3d not implemented.

        # conv_classifier_3d: two 1x1x1 convs on a 1x1x1 grid == MLP on [B, C].
        gmp_f32 = gmp.astype(jnp.float32)
        h = jnp.dot(gmp_f32, w1_ref[...], preferred_element_type=jnp.float32)
        h = jnp.maximum(h + b1_ref[...], 0.0)
        logits = jnp.dot(h, w2_ref[...], preferred_element_type=jnp.float32)
        logits = logits + b2_ref[...]
        logits_ref[...] = logits.astype(logits_ref.dtype)

        # Softmax over the class dimension (dim=1 in the PyTorch module).
        m = jnp.max(logits, axis=-1, keepdims=True)
        e = jnp.exp(logits - m)
        probs = e / jnp.sum(e, axis=-1, keepdims=True)
        probs_ref[...] = probs.astype(probs_ref.dtype)


def _pick_spatial_tile(s_total, batch, chans, bytes_per_elem, requested=None):
    """Lane-aligned spatial tile sized so a double-buffered x slab stays ~4 MiB."""
    if requested is None:
        target_elems = (4 * 1024 * 1024) // max(1, bytes_per_elem * batch * chans)
        ts = max(_LANE, (target_elems // _LANE) * _LANE)
    else:
        ts = requested
    if ts >= s_total:
        return s_total                         # single full block (block dim == array dim)
    return max(_LANE, (ts // _LANE) * _LANE)   # multiple of 128 lanes when tiling


def fuse_head_3d_classifier(x, w1, b1, w2, b2, *, spatial_tile=None):
    """x: [B, C, Z, Y, X]. Returns (gmp_features [B,C], logits [B,nc], probs [B,nc])."""
    B, C, Z, Y, X = x.shape
    S = Z * Y * X
    x3 = x.reshape(B, C, S)
    hidden = w1.shape[1]
    num_classes = w2.shape[1]

    ts = _pick_spatial_tile(S, B, C, x.dtype.itemsize, spatial_tile)
    n_s = pl.cdiv(S, ts)
    needs_mask = (S % ts) != 0

    kernel = functools.partial(_head3d_kernel, s_total=S, ts=ts,
                               needs_mask=needs_mask)

    # Advisory cost: this is a long, memory-bound custom call (reads all of x).
    cost = pl.CostEstimate(
        flops=B * C * S + 2 * B * C * hidden + 2 * B * hidden * num_classes,
        transcendentals=B * num_classes,
        bytes_accessed=B * C * S * x.dtype.itemsize
        + (C * hidden + hidden + hidden * num_classes + num_classes) * 4
        + (B * C + 2 * B * num_classes) * 4,
    )

    grid_spec = pltpu.PrefetchScalarGridSpec(
        num_scalar_prefetch=0,
        grid=(n_s,),
        in_specs=[
            pl.BlockSpec((B, C, ts), lambda s: (0, 0, s)),         # streamed over S
            pl.BlockSpec((C, hidden), lambda s: (0, 0)),           # resident weights
            pl.BlockSpec((1, hidden), lambda s: (0, 0)),
            pl.BlockSpec((hidden, num_classes), lambda s: (0, 0)),
            pl.BlockSpec((1, num_classes), lambda s: (0, 0)),
        ],
        out_specs=(
            pl.BlockSpec((B, C), lambda s: (0, 0)),                # written in epilogue
            pl.BlockSpec((B, num_classes), lambda s: (0, 0)),
            pl.BlockSpec((B, num_classes), lambda s: (0, 0)),
        ),
        scratch_shapes=[pltpu.VMEM((B, C, ts), x.dtype)],          # running-max partials
    )

    gmp, logits, probs = pl.pallas_call(
        kernel,
        out_shape=(
            jax.ShapeDtypeStruct((B, C), x.dtype),
            jax.ShapeDtypeStruct((B, num_classes), jnp.float32),
            jax.ShapeDtypeStruct((B, num_classes), jnp.float32),
        ),
        grid_spec=grid_spec,
        compiler_params=pltpu.CompilerParams(
            dimension_semantics=("arbitrary",),      # S is a reduction axis
            vmem_limit_bytes=32 * 1024 * 1024,       # raise v5e's 16 MiB scoped default
        ),
        cost_estimate=cost,
    )(x3, w1, b1, w2, b2)
    return gmp, logits, probs


if __name__ == "__main__":
    # Small shapes consistent with the module:
    #   conv_inputs = (('model.backbone_features', 64),) -> C = 64
    #   conv_classifier_3d hidden = 256 (fixed), num_classes = 3
    B, C, Z, Y, X = 2, 64, 4, 8, 8          # S = 256 -> two 128-wide spatial tiles
    HIDDEN, NUM_CLASSES = 256, 3

    key = jax.random.PRNGKey(0)
    kx, kw1, kb1, kw2, kb2 = jax.random.split(key, 5)

    x = jax.random.normal(kx, (B, C, Z, Y, X), dtype=jnp.float32)
    # Conv3d(C, 256, k=1) parameters stored as [in, out] for x @ W.
    w1 = jax.random.uniform(kw1, (C, HIDDEN), jnp.float32, -0.1, 0.1)
    b1 = jax.random.uniform(kb1, (1, HIDDEN), jnp.float32, -0.1, 0.1)
    # Conv3d(256, num_classes, k=1) parameters.
    w2 = jax.random.uniform(kw2, (HIDDEN, NUM_CLASSES), jnp.float32, -0.1, 0.1)
    b2 = jax.random.uniform(kb2, (1, NUM_CLASSES), jnp.float32, -0.1, 0.1)

    gmp, logits, probs = fuse_head_3d_classifier(x, w1, b1, w2, b2,
                                                 spatial_tile=128)
    jax.block_until_ready((gmp, logits, probs))

    # Pure-JAX reference check.
    gmp_ref = jnp.max(x.reshape(B, C, -1), axis=-1)
    h_ref = jnp.maximum(gmp_ref @ w1 + b1, 0.0)
    logits_ref = h_ref @ w2 + b2
    probs_ref = jax.nn.softmax(logits_ref, axis=1)
    assert jnp.allclose(gmp, gmp_ref, atol=1e-5)
    assert jnp.allclose(logits, logits_ref, atol=1e-4)
    assert jnp.allclose(probs, probs_ref, atol=1e-5)

    print("KERNEL_OK")
</pallas_src>

<mosaic_0001>
module attributes {stable_mosaic.version = 11 : i64} {
  func.func @_head3d_kernel(%arg0: i32, %arg1: memref<2x64x128xf32, #tpu.memory_space<vmem>>, %arg2: memref<64x256xf32, #tpu.memory_space<vmem>>, %arg3: memref<1x256xf32, #tpu.memory_space<vmem>>, %arg4: memref<256x3xf32, #tpu.memory_space<vmem>>, %arg5: memref<1x3xf32, #tpu.memory_space<vmem>>, %arg6: memref<2x64xf32, #tpu.memory_space<vmem>>, %arg7: memref<2x3xf32, #tpu.memory_space<vmem>>, %arg8: memref<2x3xf32, #tpu.memory_space<vmem>>, %arg9: memref<2x64x128xf32, #tpu.memory_space<vmem>>) attributes {dimension_semantics = [#tpu.dimension_semantics<arbitrary>], iteration_bounds = array<i64: 2>, scalar_prefetch = 0 : i64, scratch_operands = 1 : i64, tpu.core_type = #tpu.core_type<tc>, window_params = [{transform_indices = @transform_0, window_bounds = array<i64: 2, 64, 128>}, {pipeline_mode = #tpu.pipeline_mode<synchronous>, transform_indices = @transform_1, window_bounds = array<i64: 64, 256>}, {pipeline_mode = #tpu.pipeline_mode<synchronous>, transform_indices = @transform_2, window_bounds = array<i64: 1, 256>}, {pipeline_mode = #tpu.pipeline_mode<synchronous>, transform_indices = @transform_3, window_bounds = array<i64: 256, 3>}, {pipeline_mode = #tpu.pipeline_mode<synchronous>, transform_indices = @transform_4, window_bounds = array<i64: 1, 3>}, {pipeline_mode = #tpu.pipeline_mode<synchronous>, transform_indices = @transform_5, window_bounds = array<i64: 2, 64>}, {pipeline_mode = #tpu.pipeline_mode<synchronous>, transform_indices = @transform_6, window_bounds = array<i64: 2, 3>}, {pipeline_mode = #tpu.pipeline_mode<synchronous>, transform_indices = @transform_7, window_bounds = array<i64: 2, 3>}]} {
    %c0_i32 = arith.constant 0 : i32
    %0 = arith.cmpi eq, %arg0, %c0_i32 : i32
    %1 = arith.extui %0 : i1 to i32
    %c0_i32_0 = arith.constant 0 : i32
    %2 = arith.cmpi ne, %1, %c0_i32_0 : i32
    scf.if %2 {
      %cst = arith.constant 0xFF800000 : f32
      %10 = vector.broadcast %cst : f32 to vector<2x64x128xf32>
      %c0_10 = arith.constant 0 : index
      %c0_11 = arith.constant 0 : index
      %c0_12 = arith.constant 0 : index
      %11 = vector.load %arg9[%c0_10, %c0_11, %c0_12] : memref<2x64x128xf32, #tpu.memory_space<vmem>>, vector<2x64x128xf32>
      tpu.vector_store %arg9[%c0_10, %c0_11, %c0_12], %10 {strides = array<i32>} : memref<2x64x128xf32, #tpu.memory_space<vmem>>, vector<2x64x128xf32>,
    } else {
    }
    %c0 = arith.constant 0 : index
    %c0_1 = arith.constant 0 : index
    %c0_2 = arith.constant 0 : index
    %3 = vector.load %arg1[%c0, %c0_1, %c0_2] : memref<2x64x128xf32, #tpu.memory_space<vmem>>, vector<2x64x128xf32>
    %c0_3 = arith.constant 0 : index
    %c0_4 = arith.constant 0 : index
    %c0_5 = arith.constant 0 : index
    %4 = vector.load %arg9[%c0_3, %c0_4, %c0_5] : memref<2x64x128xf32, #tpu.memory_space<vmem>>, vector<2x64x128xf32>
    %5 = arith.maximumf %4, %3 : vector<2x64x128xf32>
    %c0_6 = arith.constant 0 : index
    %c0_7 = arith.constant 0 : index
    %c0_8 = arith.constant 0 : index
    %6 = vector.load %arg9[%c0_6, %c0_7, %c0_8] : memref<2x64x128xf32, #tpu.memory_space<vmem>>, vector<2x64x128xf32>
    tpu.vector_store %arg9[%c0_6, %c0_7, %c0_8], %5 {strides = array<i32>} : memref<2x64x128xf32, #tpu.memory_space<vmem>>, vector<2x64x128xf32>,
    %c1_i32 = arith.constant 1 : i32
    %7 = arith.cmpi eq, %arg0, %c1_i32 : i32
    %8 = arith.extui %7 : i1 to i32
    %c0_i32_9 = arith.constant 0 : i32
    %9 = arith.cmpi ne, %8, %c0_i32_9 : i32
    scf.if %9 {
      %c0_10 = arith.constant 0 : index
      %c0_11 = arith.constant 0 : index
      %c0_12 = arith.constant 0 : index
      %10 = vector.load %arg9[%c0_10, %c0_11, %c0_12] : memref<2x64x128xf32, #tpu.memory_space<vmem>>, vector<2x64x128xf32>
      %cst = arith.constant dense<0xFF800000> : vector<2x64xf32>
      %11 = vector.multi_reduction <maximumf>, %10, %cst [2] : vector<2x64x128xf32> to vector<2x64xf32>
      %c0_13 = arith.constant 0 : index
      %c0_14 = arith.constant 0 : index
      %12 = vector.load %arg6[%c0_13, %c0_14] : memref<2x64xf32, #tpu.memory_space<vmem>>, vector<2x64xf32>
      tpu.vector_store %arg6[%c0_13, %c0_14], %11 {strides = array<i32>} : memref<2x64xf32, #tpu.memory_space<vmem>>, vector<2x64xf32>,
      %c0_15 = arith.constant 0 : index
      %c0_16 = arith.constant 0 : index
      %13 = vector.load %arg2[%c0_15, %c0_16] : memref<64x256xf32, #tpu.memory_space<vmem>>, vector<64x256xf32>
      %cst_17 = arith.constant dense<0.000000e+00> : vector<2x256xf32>
      %14 = tpu.matmul %11, %13, %cst_17 {dimension_numbers = #tpu.dot_dimension_numbers<[1], [0], [0], [1], [0, 0, 1, 1], [], []>} : vector<2x64xf32>, vector<64x256xf32>, vector<2x256xf32> -> vector<2x256xf32>
      %c0_18 = arith.constant 0 : index
      %c0_19 = arith.constant 0 : index
      %15 = vector.load %arg3[%c0_18, %c0_19] : memref<1x256xf32, #tpu.memory_space<vmem>>, vector<1x256xf32>
      %16 = vector.broadcast %15 : vector<1x256xf32> to vector<2x256xf32>
      %17 = arith.addf %14, %16 : vector<2x256xf32>
      %cst_20 = arith.constant 0.000000e+00 : f32
      %18 = vector.broadcast %cst_20 : f32 to vector<2x256xf32>
      %19 = arith.maximumf %17, %18 : vector<2x256xf32>
      %c0_21 = arith.constant 0 : index
      %c0_22 = arith.constant 0 : index
      %20 = vector.load %arg4[%c0_21, %c0_22] : memref<256x3xf32, #tpu.memory_space<vmem>>, vector<256x3xf32>
      %cst_23 = arith.constant dense<0.000000e+00> : vector<2x3xf32>
      %21 = tpu.matmul %19, %20, %cst_23 {dimension_numbers = #tpu.dot_dimension_numbers<[1], [0], [0], [1], [0, 0, 1, 1], [], []>} : vector<2x256xf32>, vector<256x3xf32>, vector<2x3xf32> -> vector<2x3xf32>
      %c0_24 = arith.constant 0 : index
      %c0_25 = arith.constant 0 : index
      %22 = vector.load %arg5[%c0_24, %c0_25] : memref<1x3xf32, #tpu.memory_space<vmem>>, vector<1x3xf32>
      %23 = vector.broadcast %22 : vector<1x3xf32> to vector<2x3xf32>
      %24 = arith.addf %21, %23 : vector<2x3xf32>
      %c0_26 = arith.constant 0 : index
      %c0_27 = arith.constant 0 : index
      %25 = vector.load %arg7[%c0_26, %c0_27] : memref<2x3xf32, #tpu.memory_space<vmem>>, vector<2x3xf32>
      tpu.vector_store %arg7[%c0_26, %c0_27], %24 {strides = array<i32>} : memref<2x3xf32, #tpu.memory_space<vmem>>, vector<2x3xf32>,
      %cst_28 = arith.constant dense<0xFF800000> : vector<2xf32>
      %26 = vector.multi_reduction <maximumf>, %24, %cst_28 [1] : vector<2x3xf32> to vector<2xf32>
      %27 = vector.shape_cast %26 : vector<2xf32> to vector<2x1xf32>
      %28 = vector.broadcast %27 : vector<2x1xf32> to vector<2x3xf32>
      %29 = arith.subf %24, %28 : vector<2x3xf32>
      %30 = math.exp %29 : vector<2x3xf32>
      %cst_29 = arith.constant dense<0.000000e+00> : vector<2xf32>
      %31 = vector.multi_reduction <add>, %30, %cst_29 [1] : vector<2x3xf32> to vector<2xf32>
      %32 = vector.shape_cast %31 : vector<2xf32> to vector<2x1xf32>
      %33 = vector.broadcast %32 : vector<2x1xf32> to vector<2x3xf32>
      %34 = arith.divf %30, %33 : vector<2x3xf32>
      %c0_30 = arith.constant 0 : index
      %c0_31 = arith.constant 0 : index
      %35 = vector.load %arg8[%c0_30, %c0_31] : memref<2x3xf32, #tpu.memory_space<vmem>>, vector<2x3xf32>
      tpu.vector_store %arg8[%c0_30, %c0_31], %34 {strides = array<i32>} : memref<2x3xf32, #tpu.memory_space<vmem>>, vector<2x3xf32>,
    } else {
    }
    return
  }
  func.func @transform_0(%arg0: i32) -> (i32, i32, i32) {
    %c0_i32 = arith.constant 0 : i32
    %c0_i32_0 = arith.constant 0 : i32
    %c0_i32_1 = arith.constant 0 : i32
    return %c0_i32, %c0_i32_0, %arg0 : i32, i32, i32
  }
  func.func @transform_1(%arg0: i32) -> (i32, i32) {
    %c0_i32 = arith.constant 0 : i32
    %c0_i32_0 = arith.constant 0 : i32
    %c0_i32_1 = arith.constant 0 : i32
    return %c0_i32, %c0_i32_0 : i32, i32
  }
  func.func @transform_2(%arg0: i32) -> (i32, i32) {
    %c0_i32 = arith.constant 0 : i32
    %c0_i32_0 = arith.constant 0 : i32
    %c0_i32_1 = arith.constant 0 : i32
    return %c0_i32, %c0_i32_0 : i32, i32
  }
  func.func @transform_3(%arg0: i32) -> (i32, i32) {
    %c0_i32 = arith.constant 0 : i32
    %c0_i32_0 = arith.constant 0 : i32
    %c0_i32_1 = arith.constant 0 : i32
    return %c0_i32, %c0_i32_0 : i32, i32
  }
  func.func @transform_4(%arg0: i32) -> (i32, i32) {
    %c0_i32 = arith.constant 0 : i32
    %c0_i32_0 = arith.constant 0 : i32
    %c0_i32_1 = arith.constant 0 : i32
    return %c0_i32, %c0_i32_0 : i32, i32
  }
  func.func @transform_5(%arg0: i32) -> (i32, i32) {
    %c0_i32 = arith.constant 0 : i32
    %c0_i32_0 = arith.constant 0 : i32
    %c0_i32_1 = arith.constant 0 : i32
    return %c0_i32, %c0_i32_0 : i32, i32
  }
  func.func @transform_6(%arg0: i32) -> (i32, i32) {
    %c0_i32 = arith.constant 0 : i32
    %c0_i32_0 = arith.constant 0 : i32
    %c0_i32_1 = arith.constant 0 : i32
    return %c0_i32, %c0_i32_0 : i32, i32
  }
  func.func @transform_7(%arg0: i32) -> (i32, i32) {
    %c0_i32 = arith.constant 0 : i32
    %c0_i32_0 = arith.constant 0 : i32
    %c0_i32_1 = arith.constant 0 : i32
    return %c0_i32, %c0_i32_0 : i32, i32
  }
}

</mosaic_0001>

<bundles_post_ra>
// kernel: tpu_custom_call.1
= control target key start
LH: loop header
LB: loop body
LE: loop exit
PB: predicated region body
PF: predicated region fallthrough
CT: control target
= control target key end

     0   :  { %13 = vsyncpa [#allocation5], 0  ;;  %s1430_s0 = inlined_call_operand.vmem [shape: f32[2,64,256], index: 0, kind: input, shape index: {}]   ;;  %s1431_s1 = inlined_call_operand.hbm [shape: f32[64,256], index: 1, kind: input, shape index: {}]   ;;  %s1432_s2 = inlined_call_operand.vmem [shape: f32[1,256], index: 2, kind: input, shape index: {}]   ;;  %s1433_s3 = inlined_call_operand.vmem [shape: f32[256,3], index: 3, kind: input, shape index: {}]   ;;  %s1434_s4 = inlined_call_operand.vmem [shape: f32[1,3], index: 4, kind: input, shape index: {}]   ;;  %s1435_s5 = inlined_call_operand.hbm [shape: f32[2,64], index: 5, kind: output, shape index: {0}]   ;;  %s1436_s6 = inlined_call_operand.hbm [shape: f32[2,3], index: 6, kind: output, shape index: {1}]   ;;  %s1437_s7 = inlined_call_operand.hbm [shape: f32[2,3], index: 7, kind: output, shape index: {2}]  }
   0x1   :  { %14 = vsyncpa [#allocation6], 0 }
   0x2   :  { %15 = vsyncpa [#allocation9], 0  ;;  %s1141_s24 = smov 0   ;;  %s1143_s25 = smov 0  }
   0x3   :  { %s1145_s26 = smov 0  }
   0x4 LB: > { %s1157_s27 = sadd.s32 4294967295, %s1092_s26   ;;  %s1160_s28 = sadd.s32 1, %s1092_s26   ;;  %s1092_s26 = sphi %s1145_s26, %s1442_s26   ;;  %s1088_s25 = sphi %s1143_s25, %s1441_s25   ;;  %s1084_s24 = sphi %s1141_s24, %s1440_s24  }
   0x5   : > { %s25_s29 = ssub.s32 %s1092_s26, %s1160_s28  ;;  %s28_s30 = sadd.s32 1, %s1088_s25 }
   0x6   : > { %p26_p0 = scmp.eq.s32.totalorder %s25_s29, 0  ;;  %p35_p1 = scmp.ne.s32.totalorder %s1088_s25, %s1084_s24 }
   0x7   : > { %p36_p2 = scmp.eq.s32.totalorder %s1092_s26, 0  ;;  %p860_p3 = scmp.ge.s32.totalorder %s1092_s26, 1 }
   0x8   : > { %s1170_s8 = scalar_select %p26_p0, %s1088_s25, %s28_s30  }
   0x9   : > { %p1172_p4 = por %p36_p2, %p35_p1  ;;  %p199_p5 = scmp.lt.s32.totalorder %s1092_s26, 3 }
   0xa   : > { %p861_p6 = scmp.ne.s32.totalorder %s1157_s27, 0  ;;  %p900_p7 = scmp.eq.s32.totalorder %s1157_s27, 0 }
   0xb   : > { %p1179_p8 = pnand %p860_p3, %p199_p5  ;;  %s210_s13 = sshll.u32 %s1431_s1, 4  ;;  %s211_s13 = int_to_ptr.hbm [resolvable:$true] %s210_s13 }
   0xc   : > { %s1094_s14 = smov [#allocation4]   ;;  %s1095_s16 = smov 256  }
   0xd   : > { %p896_p9 = pneg %p1179_p8  ;;  %s212_s15 = sshll.u32 %s1094_s14, 4  ;;  %s213_s15 = int_to_ptr.vmem [resolvable:$true] %s212_s15 }
   0xe   : > { %s1096_s17 = smov 16   ;;  %p862_p11 = scmp.ge.s32.totalorder %s1092_s26, 2 }
   0xf   : > { %p897_p10 = pnand %p900_p7, %p896_p9 }
  0x10   : > { %231 = sbr.rel (%p862_p11) target bundleno = 41 (0x29), region = 32 }
  0x11   : > { %899 = dma.hbm_to_vmem [thread:$0]  (!%p897_p10), %s211_s13, 2048, %s213_s15, [#allocation5], %s1095_s16, %s1095_s16, %s1096_s17  }
  0x15   : > { %234 = sbr.rel (!%p1172_p4) target bundleno = 41 (0x29), region = 36  ;;  %s236_s18 = sand.u32 (%p1172_p4), 1, %s1088_s25  }
  0x16   : > { %s864_s19 = sshll.u32 (%p1172_p4), %s1092_s26, 3  ;;  %s863_s20 = sshll.u32 (%p1172_p4), %s236_s18, 7 }
  0x17   : > { %s1198_s23 = scalar_lea.vmem (%p1172_p4), %s1430_s0, %s864_s19  ;;  %s238_s26 = scalar_lea.vmem (%p1172_p4), [#allocation3], %s863_s20 }
  0x18   : > { %v299_v0 = vld [vmem:[%s1198_s23] sm:$0xff] (%p1172_p4)  ;;  %v301_v1 = vld [vmem:[%s1198_s23 + $0x10] sm:$0xff] (%p1172_p4) }
  0x19   : > { %v303_v2 = vld [vmem:[%s1198_s23 + $0x20] sm:$0xff] (%p1172_p4)  ;;  %300 = vst [vmem:[%s238_s26] sm:$0xff] (%p1172_p4), %v299_v0  ;;  %v305_v3 = vld [vmem:[%s1198_s23 + $0x30] sm:$0xff] (%p1172_p4) }
  0x1a   : > { %302 = vst [vmem:[%s238_s26 + $0x8] sm:$0xff] %v301_v1  ;;  %v307_v4 = vld [vmem:[%s1198_s23 + $0x40] sm:$0xff]  ;;  %v309_v5 = vld [vmem:[%s1198_s23 + $0x50] sm:$0xff] }
  0x1b   : > { %304 = vst [vmem:[%s238_s26 + $0x10] sm:$0xff] %v303_v2  ;;  %v311_v6 = vld [vmem:[%s1198_s23 + $0x60] sm:$0xff]  ;;  %v313_v7 = vld [vmem:[%s1198_s23 + $0x70] sm:$0xff] }
  0x1c   : > { %306 = vst [vmem:[%s238_s26 + $0x18] sm:$0xff] %v305_v3  ;;  %v315_v8 = vld [vmem:[%s1198_s23 + $0x80] sm:$0xff]  ;;  %v317_v9 = vld [vmem:[%s1198_s23 + $0x90] sm:$0xff] }
  0x1d   : > { %308 = vst [vmem:[%s238_s26 + $0x20] sm:$0xff] %v307_v4  ;;  %v319_v10 = vld [vmem:[%s1198_s23 + $0xa0] sm:$0xff]  ;;  %v321_v11 = vld [vmem:[%s1198_s23 + $0xb0] sm:$0xff] }
  0x1e   : > { %310 = vst [vmem:[%s238_s26 + $0x28] sm:$0xff] %v309_v5  ;;  %v323_v12 = vld [vmem:[%s1198_s23 + $0xc0] sm:$0xff]  ;;  %v325_v13 = vld [vmem:[%s1198_s23 + $0xd0] sm:$0xff] }
  0x1f   : > { %312 = vst [vmem:[%s238_s26 + $0x30] sm:$0xff] %v311_v6  ;;  %v327_v14 = vld [vmem:[%s1198_s23 + $0xe0] sm:$0xff]  ;;  %v329_v15 = vld [vmem:[%s1198_s23 + $0xf0] sm:$0xff] }
  0x20   : > { %314 = vst [vmem:[%s238_s26 + $0x38] sm:$0xff] %v313_v7 }
  0x21   : > { %316 = vst [vmem:[%s238_s26 + $0x40] sm:$0xff] %v315_v8 }
  0x22   : > { %318 = vst [vmem:[%s238_s26 + $0x48] sm:$0xff] %v317_v9 }
  0x23   : > { %320 = vst [vmem:[%s238_s26 + $0x50] sm:$0xff] %v319_v10 }
  0x24   : > { %322 = vst [vmem:[%s238_s26 + $0x58] sm:$0xff] %v321_v11 }
  0x25   : > { %324 = vst [vmem:[%s238_s26 + $0x60] sm:$0xff] %v323_v12 }
  0x26   : > { %326 = vst [vmem:[%s238_s26 + $0x68] sm:$0xff] %v325_v13 }
  0x27   : > { %328 = vst [vmem:[%s238_s26 + $0x70] sm:$0xff] %v327_v14 }
  0x28   : > { %330 = vst [vmem:[%s238_s26 + $0x78] sm:$0xff] %v329_v15 }
  0x29 PF: > { %339 = sbr.rel (%p1179_p8) target bundleno = 792 (0x318), region = 74  ;;  %s342_s29 = sand.u32 (!%p1179_p8), 1, %s1084_s24  }
  0x2a   : > { %s866_s30 = sshll.u32 (!%p1179_p8), %s342_s29, 7 }
  0x2b   : > { %s1219_s9 = scalar_lea.vmem (!%p1179_p8), [#allocation3], %s866_s30 }
  0x2e   : > { %1071 = dma.done.wait (%p900_p7), [#allocation5], 2048  }
  0x2f   : > { %1073 = vsyncadd (%p900_p7), [#allocation5], 4294965248  ;;  %376 = sbr.rel (%p861_p6) target bundleno = 69 (0x45), region = 86 }
  0x34   : > { %v1097_v16 = vmov -inf  }
  0x35   : > { %377 = vst [vmem:[#allocation2 + $0x30] sm:$0xff] %v1097_v16 }
  0x36   : > { %378 = vst [vmem:[#allocation2] sm:$0xff] %v1097_v16 }
  0x37   : > { %379 = vst [vmem:[#allocation2 + $0x58] sm:$0xff] %v1097_v16 }
  0x38   : > { %380 = vst [vmem:[#allocation2 + $0x18] sm:$0xff] %v1097_v16 }
  0x39   : > { %381 = vst [vmem:[#allocation2 + $0x50] sm:$0xff] %v1097_v16 }
  0x3a   : > { %382 = vst [vmem:[#allocation2 + $0x68] sm:$0xff] %v1097_v16 }
  0x3b   : > { %383 = vst [vmem:[#allocation2 + $0x8] sm:$0xff] %v1097_v16 }
  0x3c   : > { %384 = vst [vmem:[#allocation2 + $0x48] sm:$0xff] %v1097_v16 }
  0x3d   : > { %385 = vst [vmem:[#allocation2 + $0x40] sm:$0xff] %v1097_v16 }
  0x3e   : > { %386 = vst [vmem:[#allocation2 + $0x20] sm:$0xff] %v1097_v16 }
  0x3f   : > { %387 = vst [vmem:[#allocation2 + $0x10] sm:$0xff] %v1097_v16 }
  0x40   : > { %388 = vst [vmem:[#allocation2 + $0x38] sm:$0xff] %v1097_v16 }
  0x41   : > { %389 = vst [vmem:[#allocation2 + $0x60] sm:$0xff] %v1097_v16 }
  0x42   : > { %390 = vst [vmem:[#allocation2 + $0x70] sm:$0xff] %v1097_v16 }
  0x43   : > { %391 = vst [vmem:[#allocation2 + $0x78] sm:$0xff] %v1097_v16 }
  0x44   : > { %392 = vst [vmem:[#allocation2 + $0x28] sm:$0xff] %v1097_v16 }
  0x45 PF: > { %v393_v17 = vld [vmem:[%s1219_s9] sm:$0xff]  ;;  %v409_v18 = vld [vmem:[#allocation2 + $0x30] sm:$0xff]  ;;  %v394_v19 = vld [vmem:[%s1219_s9 + $0x8] sm:$0xff]  ;;  %p869_p12 = scmp.ne.s32.totalorder %s1157_s27, 1 }
  0x46   : > { %v425_v20 = vmax.f32 %v409_v18, %v393_v17  ;;  %v410_v21 = vld [vmem:[#allocation2] sm:$0xff]  ;;  %v395_v22 = vld [vmem:[%s1219_s9 + $0x10] sm:$0xff]  ;;  %v411_v23 = vld [vmem:[#allocation2 + $0x58] sm:$0xff] }
  0x47   : > { %v426_v24 = vmax.f32 %v410_v21, %v394_v19  ;;  %v427_v25 = vmax.f32 %v411_v23, %v395_v22  ;;  %v396_v26 = vld [vmem:[%s1219_s9 + $0x18] sm:$0xff]  ;;  %v397_v28 = vld [vmem:[%s1219_s9 + $0x20] sm:$0xff]  ;;  %v413_v30 = vld [vmem:[#allocation2 + $0x50] sm:$0xff] }
  0x48   : > { %v412_v27 = vld [vmem:[#allocation2 + $0x18] sm:$0xff]  ;;  %441 = vst [vmem:[#allocation2 + $0x30] sm:$0xff] %v425_v20  ;;  %v398_v31 = vld [vmem:[%s1219_s9 + $0x28] sm:$0xff]  ;;  %v429_v33 = vmax.f32 %v413_v30, %v397_v28  ;;  %v399_v35 = vld [vmem:[%s1219_s9 + $0x30] sm:$0xff] }
  0x49   : > { %v428_v29 = vmax.f32 %v412_v27, %v396_v26  ;;  %v414_v32 = vld [vmem:[#allocation2 + $0x68] sm:$0xff]  ;;  %442 = vst [vmem:[#allocation2] sm:$0xff] %v426_v24  ;;  %v400_v37 = vld [vmem:[%s1219_s9 + $0x38] sm:$0xff]  ;;  %v401_v40 = vld [vmem:[%s1219_s9 + $0x40] sm:$0xff] }
  0x4a   : > { %v430_v34 = vmax.f32 %v414_v32, %v398_v31  ;;  %v415_v36 = vld [vmem:[#allocation2 + $0x8] sm:$0xff]  ;;  %443 = vst [vmem:[#allocation2 + $0x58] sm:$0xff] %v427_v25  ;;  %v417_v41 = vld [vmem:[#allocation2 + $0x40] sm:$0xff]  ;;  %v403_v45 = vld [vmem:[%s1219_s9 + $0x50] sm:$0xff] }
  0x4b   : > { %v431_v38 = vmax.f32 %v415_v36, %v399_v35  ;;  %v416_v39 = vld [vmem:[#allocation2 + $0x48] sm:$0xff]  ;;  %444 = vst [vmem:[#allocation2 + $0x18] sm:$0xff] %v428_v29  ;;  %v418_v44 = vld [vmem:[#allocation2 + $0x20] sm:$0xff]  ;;  %v433_v46 = vmax.f32 %v417_v41, %v401_v40  ;;  %v419_v47 = vld [vmem:[#allocation2 + $0x10] sm:$0xff] }
  0x4c   : > { %v432_v42 = vmax.f32 %v416_v39, %v400_v37  ;;  %v402_v43 = vld [vmem:[%s1219_s9 + $0x48] sm:$0xff]  ;;  %445 = vst [vmem:[#allocation2 + $0x50] sm:$0xff] %v429_v33  ;;  %v404_v48 = vld [vmem:[%s1219_s9 + $0x58] sm:$0xff]  ;;  %v405_v51 = vld [vmem:[%s1219_s9 + $0x60] sm:$0xff]  ;;  %v435_v53 = vmax.f32 %v419_v47, %v403_v45 }
  0x4d   : > { %v420_v49 = vld [vmem:[#allocation2 + $0x38] sm:$0xff]  ;;  %446 = vst [vmem:[#allocation2 + $0x68] sm:$0xff] %v430_v34  ;;  %v434_v50 = vmax.f32 %v418_v44, %v402_v43  ;;  %v421_v52 = vld [vmem:[#allocation2 + $0x60] sm:$0xff]  ;;  %v406_v54 = vld [vmem:[%s1219_s9 + $0x68] sm:$0xff] }
  0x4e   : > { %447 = vst [vmem:[#allocation2 + $0x8] sm:$0xff] %v431_v38  ;;  %v422_v55 = vld [vmem:[#allocation2 + $0x70] sm:$0xff]  ;;  %v436_v56 = vmax.f32 %v420_v49, %v404_v48  ;;  %v423_v58 = vld [vmem:[#allocation2 + $0x78] sm:$0xff]  ;;  %v437_v59 = vmax.f32 %v421_v52, %v405_v51  ;;  %v424_v61 = vld [vmem:[#allocation2 + $0x28] sm:$0xff] }
  0x4f   : > { %448 = vst [vmem:[#allocation2 + $0x48] sm:$0xff] %v432_v42  ;;  %v407_v57 = vld [vmem:[%s1219_s9 + $0x70] sm:$0xff]  ;;  %v408_v60 = vld [vmem:[%s1219_s9 + $0x78] sm:$0xff]  ;;  %v438_v62 = vmax.f32 %v422_v55, %v406_v54 }
  0x50   : > { %449 = vst [vmem:[#allocation2 + $0x40] sm:$0xff] %v433_v46  ;;  %v439_v63 = vmax.f32 %v423_v58, %v407_v57  ;;  %v440_v0 = vmax.f32 %v424_v61, %v408_v60 }
  0x51   : > { %450 = vst [vmem:[#allocation2 + $0x20] sm:$0xff] %v434_v50 }
  0x52   : > { %451 = vst [vmem:[#allocation2 + $0x10] sm:$0xff] %v435_v53 }
  0x53   : > { %452 = vst [vmem:[#allocation2 + $0x38] sm:$0xff] %v436_v56  ;;  %460 = sbr.rel (%p869_p12) target bundleno = 780 (0x30c), region = 90 }
  0x54   : > { %453 = vst [vmem:[#allocation2 + $0x60] sm:$0xff] %v437_v59 }
  0x55   : > { %454 = vst [vmem:[#allocation2 + $0x70] sm:$0xff] %v438_v62 }
  0x56   : > { %455 = vst [vmem:[#allocation2 + $0x78] sm:$0xff] %v439_v63 }
  0x57   : > { %456 = vst [vmem:[#allocation2 + $0x28] sm:$0xff] %v440_v0 }
  0x58   : > { %v469_v1 = vld [vmem:[#allocation2 + $0x40] sm:$0xff]  ;;  %v461_v2 = vld [vmem:[#allocation2 + $0x30] sm:$0xff]  ;;  %v463_v3 = vld [vmem:[#allocation2 + $0x58] sm:$0xff]  ;;  %v525_v47 = vlaneseq  ;;  %vm530_vm0 = vcmask 130112   ;;  %vm534_vm1 = vcmask 195712   ;;  %vm538_vm2 = vcmask 261312  }
  0x59   : > { %493 = vmax.xlane.f32.xlu1 %v469_v1  ;;  %477 = vmax.xlane.f32.xlu0 %v461_v2  ;;  %v470_v4 = vld [vmem:[#allocation2 + $0x20] sm:$0xff]  ;;  %v471_v6 = vld [vmem:[#allocation2 + $0x10] sm:$0xff]  ;;  %v464_v8 = vld [vmem:[#allocation2 + $0x18] sm:$0xff]  ;;  %vm542_vm3 = vcmask 326912   ;;  %vm546_vm4 = vcmask 392512   ;;  %vm550_vm5 = vcmask 458112  }
  0x5a   : > { %481 = vmax.xlane.f32.xlu2 %v463_v3  ;;  %v462_v5 = vld [vmem:[#allocation2] sm:$0xff]  ;;  %v472_v7 = vld [vmem:[#allocation2 + $0x38] sm:$0xff]  ;;  %v465_v9 = vld [vmem:[#allocation2 + $0x50] sm:$0xff]  ;;  %v526_v53 = vand.u32 127, %v525_v47  ;;  %vm554_vm6 = vcmask 523712   ;;  %vm571_vm7 = vcmask 1041409  }
  0x5b   : > { %v466_v10 = vld [vmem:[#allocation2 + $0x68] sm:$0xff]  ;;  %v473_v11 = vld [vmem:[#allocation2 + $0x60] sm:$0xff]  ;;  %v590_v17 = vld [vmem:[#allocation4 + $0x70] sm:$0xff]  ;;  %vm574_vm8 = vcmask 517120   ;;  %vm598_vm9 = vcmask 523264   ;;  %vm719_vm10 = vcmask 17408  }
  0x5c   : > { %v474_v12 = vld [vmem:[#allocation2 + $0x70] sm:$0xff]  ;;  %v467_v14 = vld [vmem:[#allocation2 + $0x8] sm:$0xff]  ;;  %v591_v18 = vld [vmem:[#allocation4 + $0x78] sm:$0xff]  ;;  %609 = vmatpush.msra.mxu0 %v590_v17  ;;  %v528_v56 = vadd.s32 4294967288, %v526_v53  ;;  %v532_v63 = vadd.s32 4294967280, %v526_v53  ;;  %v536_v2 = vadd.s32 4294967272, %v526_v53 }
  0x5d   : > { %v475_v13 = vld [vmem:[#allocation2 + $0x78] sm:$0xff]  ;;  %v468_v15 = vld [vmem:[#allocation2 + $0x48] sm:$0xff]  ;;  %v588_v19 = vld [vmem:[#allocation4 + $0x60] sm:$0xff]  ;;  %629 = vmatpush.msra.mxu1 %v591_v18  ;;  %v548_v18 = vadd.s32 4294967248, %v526_v53 }
  0x5e   : > { %v476_v16 = vld [vmem:[#allocation2 + $0x28] sm:$0xff]  ;;  %610 = vmatpush.msra.mxu0 %v588_v19  ;;  %v586_v24 = vld [vmem:[#allocation4 + $0x50] sm:$0xff]  ;;  %v587_v25 = vld [vmem:[#allocation4 + $0x58] sm:$0xff] }
  0x5f   : > { %v589_v20 = vld [vmem:[#allocation4 + $0x68] sm:$0xff]  ;;  %v584_v26 = vld [vmem:[#allocation4 + $0x40] sm:$0xff]  ;;  %v582_v28 = vld [vmem:[#allocation4 + $0x30] sm:$0xff] }
  0x60   : > { %630 = vmatpush.msra.mxu1 %v589_v20  ;;  %611 = vmatpush.msra.mxu0 %v586_v24  ;;  %v585_v27 = vld [vmem:[#allocation4 + $0x48] sm:$0xff]  ;;  %v583_v29 = vld [vmem:[#allocation4 + $0x38] sm:$0xff]  ;;  %v580_v30 = vld [vmem:[#allocation4 + $0x20] sm:$0xff] }
  0x61   : > { %495 = vmax.xlane.f32.xlu1 %v470_v4  ;;  %479 = vmax.xlane.f32.xlu0 %v462_v5  ;;  %v581_v31 = vld [vmem:[#allocation4 + $0x28] sm:$0xff]  ;;  %v578_v35 = vld [vmem:[#allocation4 + $0x10] sm:$0xff]  ;;  %v579_v36 = vld [vmem:[#allocation4 + $0x18] sm:$0xff] }
  0x62   : > { %497 = vmax.xlane.f32.xlu2 %v471_v6  ;;  %631 = vmatpush.msra.mxu1 %v587_v25  ;;  %v576_v37 = vld [vmem:[#allocation4] sm:$0xff]  ;;  %v577_v38 = vld [vmem:[#allocation4 + $0x8] sm:$0xff]  ;;  %v658_v39 = vld [vmem:[%s1433_s3 + $0x78] sm:$0xff] }
  0x63   : > { %612 = vmatpush.msra.mxu0 %v584_v26  ;;  %v674_v40 = vld [vmem:[%s1433_s3 + $0xf8] sm:$0xff]  ;;  %v657_v41 = vld [vmem:[%s1433_s3 + $0x70] sm:$0xff]  ;;  %679 = vmatpush.msra.mxu2 %v658_v39  ;;  %v656_v43 = vld [vmem:[%s1433_s3 + $0x68] sm:$0xff] }
  0x64   : > { %632 = vmatpush.msra.mxu1 %v585_v27  ;;  %699 = vmatpush.msra.mxu3 %v674_v40  ;;  %v673_v42 = vld [vmem:[%s1433_s3 + $0xf0] sm:$0xff]  ;;  %v672_v44 = vld [vmem:[%s1433_s3 + $0xe8] sm:$0xff]  ;;  %v655_v49 = vld [vmem:[%s1433_s3 + $0x60] sm:$0xff] }
  0x65   : > { %613 = vmatpush.msra.mxu0 %v582_v28  ;;  %680 = vmatpush.msra.mxu2 %v657_v41  ;;  %v671_v50 = vld [vmem:[%s1433_s3 + $0xe0] sm:$0xff]  ;;  %v654_v51 = vld [vmem:[%s1433_s3 + $0x58] sm:$0xff]  ;;  %v653_v54 = vld [vmem:[%s1433_s3 + $0x50] sm:$0xff] }
  0x66   : > { %633 = vmatpush.msra.mxu1 %v583_v29  ;;  %700 = vmatpush.msra.mxu3 %v673_v42  ;;  %v670_v52 = vld [vmem:[%s1433_s3 + $0xd8] sm:$0xff]  ;;  %v669_v55 = vld [vmem:[%s1433_s3 + $0xd0] sm:$0xff]  ;;  %v652_v57 = vld [vmem:[%s1433_s3 + $0x48] sm:$0xff] }
  0x67   : > { %614 = vmatpush.msra.mxu0 %v580_v30  ;;  %681 = vmatpush.msra.mxu2 %v656_v43  ;;  %v668_v58 = vld [vmem:[%s1433_s3 + $0xc8] sm:$0xff]  ;;  %v651_v61 = vld [vmem:[%s1433_s3 + $0x40] sm:$0xff]  ;;  %v650_v3 = vld [vmem:[%s1433_s3 + $0x38] sm:$0xff]  ;;  %v552_v30 = vadd.s32 4294967240, %v526_v53 }
  0x68   : > { %634 = vmatpush.msra.mxu1 %v581_v31  ;;  %701 = vmatpush.msra.mxu3 %v672_v44  ;;  %v667_v62 = vld [vmem:[%s1433_s3 + $0xc0] sm:$0xff]  ;;  %v666_v4 = vld [vmem:[%s1433_s3 + $0xb8] sm:$0xff] }
  0x69   : > { %499 = vmax.xlane.f32.xlu1 %v472_v7  ;;  %483 = vmax.xlane.f32.xlu0 %v464_v8  ;;  %v649_v8 = vld [vmem:[%s1433_s3 + $0x30] sm:$0xff]  ;;  %v646_v31 = vld [vmem:[%s1433_s3 + $0x18] sm:$0xff] }
  0x6a   : > { %485 = vmax.xlane.f32.xlu2 %v465_v9  ;;  %615 = vmatpush.msra.mxu0 %v578_v35  ;;  %v665_v9 = vld [vmem:[%s1433_s3 + $0xb0] sm:$0xff] }
  0x6b   : > { %635 = vmatpush.msra.mxu1 %v579_v36  ;;  %682 = vmatpush.msra.mxu2 %v655_v49 }
  0x6c   : > { %616 = vmatpush.msra.mxu0 %v576_v37  ;;  %702 = vmatpush.msra.mxu3 %v671_v50 }
  0x6d   : > { %636 = vmatpush.msra.mxu1 %v577_v38  ;;  %683 = vmatpush.msra.mxu2 %v654_v51  ;;  %v645_v51 = vld [vmem:[%s1433_s3 + $0x10] sm:$0xff] }
  0x6e   : > { %703 = vmatpush.msra.mxu3 %v670_v52  ;;  %v661_v52 = vld [vmem:[%s1433_s3 + $0x90] sm:$0xff] }
  0x6f   : > { %684 = vmatpush.msra.mxu2 %v653_v54  ;;  %v660_v54 = vld [vmem:[%s1433_s3 + $0x88] sm:$0xff] }
  0x70   : > { %704 = vmatpush.msra.mxu3 %v669_v55  ;;  %v643_v55 = vld [vmem:[%s1433_s3] sm:$0xff] }
  0x71   : > { %487 = vmax.xlane.f32.xlu1 %v466_v10  ;;  %501 = vmax.xlane.f32.xlu0 %v473_v11  ;;  %v540_v11 = vadd.s32 4294967264, %v526_v53 }
  0x72   : > { %503 = vmax.xlane.f32.xlu2 %v474_v12  ;;  %685 = vmatpush.msra.mxu2 %v652_v57  ;;  %v592_v57 = vld [vmem:[%s1432_s2] sm:$0x3] }
  0x73   : > { %705 = vmatpush.msra.mxu3 %v668_v58  ;;  %v594_v58 = vperm.slane %v592_v57, 0 }
  0x74   : > { %686 = vmatpush.msra.mxu2 %v651_v61 }
  0x75   : > { %706 = vmatpush.msra.mxu3 %v667_v62 }
  0x76   : > { %687 = vmatpush.msra.mxu2 %v650_v3 }
  0x77   : > { %707 = vmatpush.msra.mxu3 %v666_v4 }
  0x78   : > { %688 = vmatpush.msra.mxu2 %v649_v8 }
  0x79   : > { %505 = vmax.xlane.f32.xlu1 %v475_v13  ;;  %489 = vmax.xlane.f32.xlu0 %v467_v14  ;;  %v544_v14 = vadd.s32 4294967256, %v526_v53 }
  0x7a   : > { %491 = vmax.xlane.f32.xlu2 %v468_v15  ;;  %v648_v15 = vld [vmem:[%s1433_s3 + $0x28] sm:$0xff]  ;;  %708 = vmatpush.msra.mxu3 %v665_v9 }
  0x7b   : > { %689 = vmatpush.msra.mxu2 %v648_v15 }
  0x81   : > { %507 = vmax.xlane.f32.xlu0 %v476_v16  ;;  %v664_v16 = vld [vmem:[%s1433_s3 + $0xa8] sm:$0xff] }
  0x82   : > { %709 = vmatpush.msra.mxu3 %v664_v16 }
  0xcc   : > { %v1244_v21 = vpop.xlane.xlu1 %493  ;;  %v1246_v22 = vpop.xlane.xlu0 %477 }
  0xcd   : > { %v1248_v23 = vpop.xlane.xlu2 %481  ;;  %v556_v5 = vperm.slane %v1244_v21, %v526_v53  ;;  %v527_v6 = vperm.slane %v1246_v22, %v526_v53  ;;  %v647_v22 = vld [vmem:[%s1433_s3 + $0x20] sm:$0xff]  ;;  %v644_v53 = vld [vmem:[%s1433_s3 + $0x8] sm:$0xff] }
  0xce   : > { %v533_v10 = vperm.slane %v1248_v23, %v532_v63  ;;  %v663_v23 = vld [vmem:[%s1433_s3 + $0xa0] sm:$0xff]  ;;  %690 = vmatpush.msra.mxu2 %v647_v22 }
  0xcf   : > { %710 = vmatpush.msra.mxu3 %v663_v23 }
  0xd0   : > { %691 = vmatpush.msra.mxu2 %v646_v31 }
  0xd2   : > { %692 = vmatpush.msra.mxu2 %v645_v51 }
  0xd4   : > { %v1250_v32 = vpop.xlane.xlu1 %495  ;;  %v1252_v33 = vpop.xlane.xlu0 %479  ;;  %693 = vmatpush.msra.mxu2 %v644_v53 }
  0xd5   : > { %v1254_v34 = vpop.xlane.xlu2 %497  ;;  %v529_v1 = vperm.slane %v1252_v33, %v528_v56  ;;  %v557_v7 = vperm.slane %v1250_v32, %v528_v56  ;;  %v662_v32 = vld [vmem:[%s1433_s3 + $0x98] sm:$0xff]  ;;  %v659_v56 = vld [vmem:[%s1433_s3 + $0x80] sm:$0xff] }
  0xd6   : > { %v559_v17 = vperm.slane %v1254_v34, %v532_v63  ;;  %711 = vmatpush.msra.mxu3 %v662_v32  ;;  %694 = vmatpush.msra.mxu2 %v643_v55 }
  0xd7   : > { %v531_v12 = vsel %vm530_vm0, %v529_v1, %v527_v6  ;;  %v558_v20 = vsel %vm530_vm0, %v557_v7, %v556_v5 }
  0xd8   : > { %v535_v24 = vsel %vm534_vm1, %v533_v10, %v531_v12  ;;  %v560_v33 = vsel %vm534_vm1, %v559_v17, %v558_v20  ;;  %712 = vmatpush.msra.mxu3 %v661_v52 }
  0xda   : > { %713 = vmatpush.msra.mxu3 %v660_v54 }
  0xdc   : > { %v1274_v45 = vpop.xlane.xlu1 %499  ;;  %v1276_v46 = vpop.xlane.xlu0 %483  ;;  %714 = vmatpush.msra.mxu3 %v659_v56 }
  0xdd   : > { %v1278_v48 = vpop.xlane.xlu2 %485  ;;  %v537_v13 = vperm.slane %v1276_v46, %v536_v2  ;;  %v561_v21 = vperm.slane %v1274_v45, %v536_v2  ;;  %v939_v2 = vld [vmem:[%s1434_s4] ss:$0 sm:$0xff] }
  0xde   : > { %v541_v25 = vperm.slane %v1278_v48, %v540_v11 }
  0xdf   : > { %v539_v27 = vsel %vm538_vm2, %v537_v13, %v535_v24  ;;  %v562_v36 = vsel %vm538_vm2, %v561_v21, %v560_v33 }
  0xe0   : > { %v543_v38 = vsel %vm542_vm3, %v541_v25, %v539_v27 }
  0xe4   : > { %v1304_v59 = vpop.xlane.xlu0 %501  ;;  %v1306_v60 = vpop.xlane.xlu1 %487 }
  0xe5   : > { %v1314_v0 = vpop.xlane.xlu2 %503  ;;  %v563_v26 = vperm.slane %v1304_v59, %v540_v11  ;;  %v545_v28 = vperm.slane %v1306_v60, %v544_v14  ;;  %v595_v59 = vperm.slane %v592_v57, 1 }
  0xe6   : > { %v565_v37 = vperm.slane %v1314_v0, %v544_v14 }
  0xe7   : > { %v564_v39 = vsel %vm542_vm3, %v563_v26, %v562_v36  ;;  %v547_v41 = vsel %vm546_vm4, %v545_v28, %v543_v38 }
  0xe8   : > { %v566_v45 = vsel %vm546_vm4, %v565_v37, %v564_v39 }
  0xec   : > { %v490_v19 = vpop.xlane.xlu0 %489  ;;  %v506_v29 = vpop.xlane.xlu1 %505 }
  0xed   : > { %v549_v34 = vperm.slane %v490_v19, %v548_v18  ;;  %v492_v35 = vpop.xlane.xlu2 %491  ;;  %v567_v40 = vperm.slane %v506_v29, %v548_v18 }
  0xee   : > { %v553_v42 = vperm.slane %v492_v35, %v552_v30 }
  0xef   : > { %v551_v43 = vsel %vm550_vm5, %v549_v34, %v547_v41  ;;  %v568_v47 = vsel %vm550_vm5, %v567_v40, %v566_v45 }
  0xf0   : > { %v555_v48 = vsel %vm554_vm6, %v553_v42, %v551_v43 }
  0xf4   : > { %v508_v44 = vpop.xlane.xlu0 %507 }
  0xf5   : > { %v569_v46 = vperm.slane %v508_v44, %v552_v30 }
  0xf7   : > { %v570_v49 = vsel %vm554_vm6, %v569_v46, %v568_v47 }
  0xf8   : > { %v572_v50 = vsel %vm571_vm7, %v570_v49, %v555_v48 }
  0xf9   : > { %575 = vst.msk [vmem:[#allocation7] sm:$0x3] %vm574_vm8, %v572_v50  ;;  %870 = vmatmul.msk.f32.vlgmr.msra.gmra.mxu0 %vm598_vm9, %v572_v50  ;;  %871 = vmatmul.msk.f32.vlgmr.msra.gmra.mxu1 %vm598_vm9, %v572_v50 }
 0x176   : > { %v618_v60 = vpop.f32.mrf.mxu0  ;;  %v638_v61 = vpop.f32.mrf.mxu1 }
 0x177   : > { %v619_v62 = vadd.f32 %v618_v60, %v594_v58  ;;  %v639_v63 = vadd.f32 %v638_v61, %v595_v59 }
 0x179   : > { %v641_v0 = vmax.f32 %v619_v62, 0.0  ;;  %v642_v1 = vmax.f32 %v639_v63, 0.0 }
 0x17b   : > { %695 = vmatmul.f32.vlgmr.msra.gmra.mxu2 %v641_v0  ;;  %715 = vmatmul.f32.vlgmr.msra.gmra.mxu3 %v642_v1 }
 0x1fe   : > { %v696_v3 = vpop.f32.mrf.mxu2  ;;  %v716_v5 = vpop.f32.mrf.mxu3 }
 0x1ff   : > { %v697_v4 = vadd.f32 %v939_v2, %v696_v3 }
 0x201   : > { %v717_v6 = vadd.f32 %v716_v5, %v697_v4 }
 0x203   : > { %v721_v7 = vsel %vm719_vm10, %v717_v6, -inf  ;;  %720 = vst.msk [vmem:[#allocation8] sm:$0x3] %vm719_vm10, %v717_v6 }
 0x204   : > { %722 = vmax.xlane.f32.xlu1 %v721_v7 }
 0x277   : > { %v723_v8 = vpop.xlane.xlu1 %722 }
 0x278   : > { %v724_v9 = vsub.f32 %v717_v6, %v723_v8 }
 0x27a   : > { %v725_v10 = vmul.f32 1.442695, %v724_v9 }
 0x27c   : > { %940 = vpow2.f32 %v725_v10 }
 0x282   : > { %v941_v11 = vpop.eup %940 }
 0x283   : > { %v727_v12 = vsel %vm719_vm10, %v941_v11, 0.0 }
 0x284   : > { %728 = vadd.xlane.f32.xlu2 %v727_v12 }
 0x2f7   : > { %v729_v13 = vpop.xlane.xlu2 %728 }
 0x2f8   : > { %942 = vrcp.f32 %v729_v13  ;;  %v741_v17 = vand.u32 2147483648, %v729_v13  ;;  %v739_v19 = vand.u32 2147483647, %v729_v13  ;;  %vm735_vm12 = vweird.f32 %v729_v13 }
 0x2fa   : > { %v742_v21 = vor.u32 1.1754944e-38, %v741_v17  ;;  %vm740_vm14 = vcmp.eq.f32.partialorder %v739_v19, 8.507059e+37 }
 0x2fe   : > { %v943_v14 = vpop.eup %942 }
 0x2ff   : > { %v731_v15 = vmul.f32 %v943_v14, %v729_v13  ;;  %vm736_vm11 = vweird.f32 %v943_v14 }
 0x300   : > { %vm737_vm13 = vmor %vm735_vm12, %vm736_vm11 }
 0x301   : > { %v732_v16 = vsub.f32 1.0, %v731_v15 }
 0x303   : > { %v733_v18 = vmul.f32 %v943_v14, %v732_v16 }
 0x305   : > { %v734_v20 = vadd.f32 %v943_v14, %v733_v18 }
 0x307   : > { %v738_v22 = vsel %vm737_vm13, %v943_v14, %v734_v20 }
 0x308   : > { %v743_v23 = vsel %vm740_vm14, %v742_v21, %v738_v22 }
 0x309   : > { %v744_v24 = vmul.f32 %v941_v11, %v743_v23 }
 0x30b   : > { %745 = vst.msk [vmem:[#allocation10] sm:$0x3] %vm719_vm10, %v744_v24 }
 0x30c PF: > { %p902_p13 = scmp.eq.s32.totalorder %s1157_s27, 1  ;;  %s1098_s20 = smov [#allocation8]  }
 0x30d   : > { %s764_s21 = sshll.u32 %s1098_s20, 4  ;;  %s766_s26 = sshll.u32 %s1436_s6, 4  ;;  %s765_s21 = int_to_ptr.vmem [resolvable:$true] %s764_s21  ;;  %s767_s26 = int_to_ptr.hbm [resolvable:$true] %s766_s26 }
 0x30e   : > { %887 = dma.vmem_to_hbm [thread:$0]  (%p902_p13), %s765_s21, 32, %s767_s26, [#allocation9]  }
 0x30f   : > { %s754_s9 = sshll.u32 %s1435_s5, 4  ;;  %s1099_s24 = smov [#allocation7]   ;;  %s755_s9 = int_to_ptr.hbm [resolvable:$true] %s754_s9 }
 0x310   : > { %s752_s10 = sshll.u32 %s1099_s24, 4  ;;  %s1100_s11 = smov [#allocation10]   ;;  %s753_s10 = int_to_ptr.vmem [resolvable:$true] %s752_s10 }
 0x311   : > { %885 = dma.vmem_to_hbm [thread:$0]  (%p902_p13), %s753_s10, 32, %s755_s9, [#allocation6]  }
 0x312   : > { %s776_s12 = sshll.u32 %s1100_s11, 4  ;;  %s778_s15 = sshll.u32 %s1437_s7, 4  ;;  %s777_s12 = int_to_ptr.vmem [resolvable:$true] %s776_s12  ;;  %s779_s15 = int_to_ptr.hbm [resolvable:$true] %s778_s15 }
 0x313   : > { %889 = dma.vmem_to_hbm [thread:$0]  (%p902_p13), %s777_s12, 32, %s779_s15, [#allocation9]  }
 0x314   : > { %1075 = dma.done.wait (%p902_p13), [#allocation6], 32  }
 0x315   : > { %1077 = vsyncadd (%p902_p13), [#allocation6], 4294967264 }
 0x316   : > { %1079 = dma.done.wait (%p902_p13), [#allocation9], 64  }
 0x317   : > { %1081 = vsyncadd (%p902_p13), [#allocation9], 4294967232 }
 0x318 PF: > { %p18_p0 = scmp.ge.s32.totalorder %s1160_s28, 4   ;;  %s1440_s24 = smov %s1088_s25 }
 0x319   : > { %s1441_s25 = smov %s1170_s8  ;;  %s1442_s26 = smov %s1160_s28 }
 0x31a   :  { %20 = sbr.rel (!%p18_p0) target bundleno = 4 (0x4), region = 139 }
 0x31f   :  { %802 = vsyncpa [#allocation5], 1 }
 0x320   :  { %804 = vsyncpa [#allocation5 + $0x1], 1 }
 0x321   :  { %805 = vsyncpa [#allocation6], 1 }
 0x322   :  { %807 = vsyncpa [#allocation6 + $0x1], 1 }
 0x323   :  { %808 = vsyncpa [#allocation9], 1 }

</bundles_post_ra>
